<compile_context>
chip_gen: v7x
topology: tpu7x:2x2x1
jax: 0.10.0
libtpu: 0.0.40
codegen_flags: <defaults>
</compile_context>

<pallas_src>
import numpy as np
import jax
import jax.numpy as jnp
from jax.experimental import pallas as pl
from jax.experimental.pallas import tpu as pltpu

_LOG_2PI = float(np.log(2.0 * np.pi))


def _make_kernel(G_total):
    g_total = float(G_total)

    def kernel(log_sigma_ref, x_ref, mu_ref, out_ref):
        k = pl.program_id(1)

        @pl.when(k == 0)
        def _init():
            out_ref[...] = jnp.zeros_like(out_ref)

        d = x_ref[...] - mu_ref[...]
        out_ref[...] += jnp.sum(d * d, axis=1, keepdims=True)

        @pl.when(k == pl.num_programs(1) - 1)
        def _finalize():
            log_sigma = log_sigma_ref[0]
            inv_sigma2 = jnp.exp(-2.0 * log_sigma)            # 1 / sigma**2
            const = g_total * (_LOG_2PI + 2.0 * log_sigma)    # G * log(2*pi*sigma^2)
            out_ref[...] = 0.5 * (const + out_ref[...] * inv_sigma2)

    return kernel


def _round_up(v, m):
    return ((v + m - 1) // m) * m


def _choose_tiles(B, G):
    # Reduction tile: full G when modest, otherwise a 128-multiple divisor of G
    # so no padded garbage ever enters the row sums.
    block_g = G
    if G > 2048:
        for cand in (2048, 1024, 512, 256, 128):
            if G % cand == 0:
                block_g = cand
                break
    # Batch tile: biggest tile keeping 2 inputs x 2 pipeline buffers <= ~16 MiB.
    budget_elems = (16 * 1024 * 1024) // (2 * 2 * 4)          # ~1 Mi f32 per input block
    max_bb = max(8, min(1024, ((budget_elems // block_g) // 8) * 8))
    if B <= 256:
        block_b = B                         # single block ("full dim" layout rule)
    else:
        # keep >= 2 batch grid steps (both v7x TensorCores) within the VMEM budget
        block_b = min(max_bb, _round_up(-(-B // 2), 8))
    return block_b, block_g


def gaussian_loss(x, mu, log_sigma, *, block_b=None, block_g=None):
    """Pallas equivalent of GaussianLoss(G).forward(x, mu) -> shape (B,)."""
    x = jnp.asarray(x, jnp.float32)
    mu = jnp.asarray(mu, jnp.float32)
    log_sigma = jnp.asarray(log_sigma, jnp.float32).reshape((1,))
    B, G = x.shape
    assert mu.shape == (B, G)

    auto_bb, auto_bg = _choose_tiles(B, G)
    block_b = auto_bb if block_b is None else block_b
    block_g = auto_bg if block_g is None else block_g
    assert G % block_g == 0, "reduction tile must divide G"

    grid = (pl.cdiv(B, block_b), G // block_g)

    out = pl.pallas_call(
        _make_kernel(G),
        out_shape=jax.ShapeDtypeStruct((B, 1), jnp.float32),
        grid_spec=pltpu.PrefetchScalarGridSpec(
            num_scalar_prefetch=1,
            grid=grid,
            in_specs=[
                pl.BlockSpec((block_b, block_g), lambda i, k, ls: (i, k)),
                pl.BlockSpec((block_b, block_g), lambda i, k, ls: (i, k)),
            ],
            out_specs=pl.BlockSpec((block_b, 1), lambda i, k, ls: (i, 0)),
        ),
        compiler_params=pltpu.CompilerParams(
            dimension_semantics=("parallel", "arbitrary"),
            vmem_limit_bytes=32 * 1024 * 1024,
        ),
    )(log_sigma, x, mu)
    return out[:, 0]


def gaussian_loss_ref(x, mu, log_sigma):
    sigma2 = jnp.exp(2.0 * log_sigma[0])
    term1 = jnp.log(2.0 * np.pi * sigma2)
    term2 = (x - mu) ** 2 / sigma2
    log_lik = -0.5 * jnp.sum(term1 + term2, axis=1)
    return -log_lik


def _check(B, G, key, **tile_kwargs):
    kx, kmu = jax.random.split(key)
    x = jax.random.normal(kx, (B, G), dtype=jnp.float32)
    mu = jax.random.normal(kmu, (B, G), dtype=jnp.float32)
    log_sigma = jnp.array([np.log(0.1)], dtype=jnp.float32)
    got = jax.block_until_ready(gaussian_loss(x, mu, log_sigma, **tile_kwargs))
    want = gaussian_loss_ref(x, mu, log_sigma)
    np.testing.assert_allclose(np.asarray(got), np.asarray(want),
                               rtol=1e-4, atol=1e-4)


if __name__ == "__main__":
    # GaussianLoss(G=32) with default equal_variance=False -> log_sigma = log(0.1)
    key = jax.random.PRNGKey(0)
    k0, k1, k2 = jax.random.split(key, 3)
    _check(8, 32, k0)                        # module-sized test (B=8, G=32)
    _check(100, 32, k1, block_b=48)          # masked partial batch blocks
    _check(640, 256, k2, block_g=128)        # multi-step reduction grid axis
    print("KERNEL_OK")
</pallas_src>

<mosaic_0001>
module attributes {stable_mosaic.version = 11 : i64} {
  func.func @kernel(%arg0: i32, %arg1: i32, %arg2: memref<1xf32, #tpu.memory_space<smem>>, %arg3: memref<8x32xf32, #tpu.memory_space<vmem>>, %arg4: memref<8x32xf32, #tpu.memory_space<vmem>>, %arg5: memref<8x1xf32, #tpu.memory_space<vmem>>) attributes {dimension_semantics = [#tpu.dimension_semantics<parallel>, #tpu.dimension_semantics<arbitrary>], iteration_bounds = array<i64: 1, 1>, scalar_prefetch = 1 : i64, scratch_operands = 0 : i64, tpu.core_type = #tpu.core_type<tc>, window_params = [{transform_indices = @transform_0, window_bounds = array<i64: 8, 32>}, {transform_indices = @transform_1, window_bounds = array<i64: 8, 32>}, {transform_indices = @transform_2, window_bounds = array<i64: 8, 1>}]} {
    %c0_i32 = arith.constant 0 : i32
    %0 = arith.cmpi eq, %arg1, %c0_i32 : i32
    %1 = arith.extui %0 : i1 to i32
    %c0_i32_0 = arith.constant 0 : i32
    %2 = arith.cmpi ne, %1, %c0_i32_0 : i32
    scf.if %2 {
      %cst_10 = arith.constant 0.000000e+00 : f32
      %15 = vector.broadcast %cst_10 : f32 to vector<8x1xf32>
      %c0_11 = arith.constant 0 : index
      %c0_12 = arith.constant 0 : index
      %16 = vector.load %arg5[%c0_11, %c0_12] : memref<8x1xf32, #tpu.memory_space<vmem>>, vector<8x1xf32>
      tpu.vector_store %arg5[%c0_11, %c0_12], %15 {strides = array<i32>} : memref<8x1xf32, #tpu.memory_space<vmem>>, vector<8x1xf32>,
    } else {
    }
    %c0 = arith.constant 0 : index
    %c0_1 = arith.constant 0 : index
    %3 = vector.load %arg3[%c0, %c0_1] : memref<8x32xf32, #tpu.memory_space<vmem>>, vector<8x32xf32>
    %c0_2 = arith.constant 0 : index
    %c0_3 = arith.constant 0 : index
    %4 = vector.load %arg4[%c0_2, %c0_3] : memref<8x32xf32, #tpu.memory_space<vmem>>, vector<8x32xf32>
    %5 = arith.subf %3, %4 : vector<8x32xf32>
    %c0_4 = arith.constant 0 : index
    %c0_5 = arith.constant 0 : index
    %6 = vector.load %arg5[%c0_4, %c0_5] : memref<8x1xf32, #tpu.memory_space<vmem>>, vector<8x1xf32>
    %7 = arith.mulf %5, %5 : vector<8x32xf32>
    %cst = arith.constant dense<0.000000e+00> : vector<8xf32>
    %8 = vector.multi_reduction <add>, %7, %cst [1] : vector<8x32xf32> to vector<8xf32>
    %9 = vector.shape_cast %8 : vector<8xf32> to vector<8x1xf32>
    %10 = arith.addf %6, %9 : vector<8x1xf32>
    %c0_6 = arith.constant 0 : index
    %c0_7 = arith.constant 0 : index
    %11 = vector.load %arg5[%c0_6, %c0_7] : memref<8x1xf32, #tpu.memory_space<vmem>>, vector<8x1xf32>
    tpu.vector_store %arg5[%c0_6, %c0_7], %10 {strides = array<i32>} : memref<8x1xf32, #tpu.memory_space<vmem>>, vector<8x1xf32>,
    %c0_i32_8 = arith.constant 0 : i32
    %12 = arith.cmpi eq, %arg1, %c0_i32_8 : i32
    %13 = arith.extui %12 : i1 to i32
    %c0_i32_9 = arith.constant 0 : i32
    %14 = arith.cmpi ne, %13, %c0_i32_9 : i32
    scf.if %14 {
      %c0_10 = arith.constant 0 : index
      %15 = memref.load %arg2[%c0_10] : memref<1xf32, #tpu.memory_space<smem>>
      %cst_11 = arith.constant -2.000000e+00 : f32
      %16 = arith.mulf %cst_11, %15 : f32
      %17 = math.exp %16 : f32
      %cst_12 = arith.constant 2.000000e+00 : f32
      %18 = arith.mulf %cst_12, %15 : f32
      %cst_13 = arith.constant 1.83787704 : f32
      %19 = arith.addf %cst_13, %18 : f32
      %cst_14 = arith.constant 3.200000e+01 : f32
      %20 = arith.mulf %cst_14, %19 : f32
      %c0_15 = arith.constant 0 : index
      %c0_16 = arith.constant 0 : index
      %21 = vector.load %arg5[%c0_15, %c0_16] : memref<8x1xf32, #tpu.memory_space<vmem>>, vector<8x1xf32>
      %22 = vector.broadcast %17 : f32 to vector<8x1xf32>
      %23 = arith.mulf %21, %22 : vector<8x1xf32>
      %24 = vector.broadcast %20 : f32 to vector<8x1xf32>
      %25 = arith.addf %24, %23 : vector<8x1xf32>
      %cst_17 = arith.constant 5.000000e-01 : f32
      %26 = vector.broadcast %cst_17 : f32 to vector<8x1xf32>
      %27 = arith.mulf %26, %25 : vector<8x1xf32>
      %c0_18 = arith.constant 0 : index
      %c0_19 = arith.constant 0 : index
      %28 = vector.load %arg5[%c0_18, %c0_19] : memref<8x1xf32, #tpu.memory_space<vmem>>, vector<8x1xf32>
      tpu.vector_store %arg5[%c0_18, %c0_19], %27 {strides = array<i32>} : memref<8x1xf32, #tpu.memory_space<vmem>>, vector<8x1xf32>,
    } else {
    }
    return
  }
  func.func @transform_0(%arg0: i32, %arg1: i32, %arg2: memref<1xf32, #tpu.memory_space<smem>>) -> (i32, i32) {
    %c0_i32 = arith.constant 0 : i32
    return %arg0, %arg1 : i32, i32
  }
  func.func @transform_1(%arg0: i32, %arg1: i32, %arg2: memref<1xf32, #tpu.memory_space<smem>>) -> (i32, i32) {
    %c0_i32 = arith.constant 0 : i32
    return %arg0, %arg1 : i32, i32
  }
  func.func @transform_2(%arg0: i32, %arg1: i32, %arg2: memref<1xf32, #tpu.memory_space<smem>>) -> (i32, i32) {
    %c0_i32 = arith.constant 0 : i32
    %c0_i32_0 = arith.constant 0 : i32
    return %arg0, %c0_i32 : i32, i32
  }
}

</mosaic_0001>

<bundles_post_ra>
// kernel: tpu_custom_call.1
= control target key start
LH: loop header
LB: loop body
LE: loop exit
PB: predicated region body
PF: predicated region fallthrough
CT: control target
= control target key end

     0   :  { %9 = vsyncpa [#allocation5], 0  ;;  %s206_s0 = inlined_call_operand.<no memory space> [shape: f32[1], index: 0, kind: input, shape index: {}]   ;;  %s207_s1 = inlined_call_operand.hbm [shape: f32[8,32], index: 1, kind: input, shape index: {}]   ;;  %s208_s2 = inlined_call_operand.hbm [shape: f32[8,32], index: 2, kind: input, shape index: {}]   ;;  %s209_s3 = inlined_call_operand.vmem [shape: f32[8,1], index: 3, kind: output, shape index: {}]  }
   0x1   :  { %10 = vsyncpa [#allocation7], 0  ;;  %s135_s12 = smov [#allocation4]   ;;  %s136_s14 = smov [#allocation6]  }
   0x2   :  { %s17_s13 = sshll.u32 %s135_s12, 4  ;;  %s27_s15 = sshll.u32 %s136_s14, 4  ;;  %s18_s13 = int_to_ptr.vmem [resolvable:$true] %s17_s13  ;;  %s28_s15 = int_to_ptr.vmem [resolvable:$true] %s27_s15 }
   0x3   :  { %s87_s18 = scalar_lea.hbm %s207_s1, 128 }
   0x4   :  { %p88_p0 = scmp.ne.s32.totalorder %s207_s1, %s87_s18  ;;  %p91_p1 = scmp.lt.u32.totalorder %s87_s18, %s207_s1 }
   0x6   :  { %p93_p2 = pnand %p91_p1, %p88_p0 }
   0x8   :  { %96 = shalt.err (!%p93_p2)
}
   0x9   :  { %s97_s23 = scalar_lea.vmem %s18_s13, 128  ;;  %p102_p4 = scmp.lt.s32.totalorder %s18_s13, %s18_s13 }
   0xa   :  { %p98_p3 = scmp.ne.s32.totalorder %s18_s13, %s97_s23  ;;  %p103_p5 = scmp.lt.s32.totalorder %s97_s23, %s97_s23 }
   0xc   :  { %p104_p6 = por %p103_p5, %p102_p4 }
   0xe   :  { %p105_p7 = pnand %p104_p6, %p98_p3 }
  0x10   :  { %108 = shalt.err (!%p105_p7)
}
  0x11   :  { %20 = dma.hbm_to_vmem [thread:$0]  %s207_s1, 128, %s18_s13, [#allocation5]  }
  0x12   :  { %s109_s28 = scalar_lea.hbm %s208_s2, 128 }
  0x13   :  { %p110_p8 = scmp.ne.s32.totalorder %s208_s2, %s109_s28  ;;  %p113_p9 = scmp.lt.u32.totalorder %s109_s28, %s208_s2 }
  0x15   :  { %p115_p10 = pnand %p113_p9, %p110_p8 }
  0x17   :  { %118 = shalt.err (!%p115_p10)
}
  0x18   :  { %s119_s6 = scalar_lea.vmem %s28_s15, 128  ;;  %p124_p12 = scmp.lt.s32.totalorder %s28_s15, %s28_s15 }
  0x19   :  { %p120_p11 = scmp.ne.s32.totalorder %s28_s15, %s119_s6  ;;  %p125_p13 = scmp.lt.s32.totalorder %s119_s6, %s119_s6 }
  0x1b   :  { %p126_p0 = por %p125_p13, %p124_p12 }
  0x1d   :  { %p127_p1 = pnand %p126_p0, %p120_p11 }
  0x1f   :  { %130 = shalt.err (!%p127_p1)
}
  0x20   :  { %30 = dma.hbm_to_vmem [thread:$0]  %s208_s2, 128, %s28_s15, [#allocation7]  }
  0x21   :  { %131 = dma.done.wait [#allocation5], 128  }
  0x22   :  { %132 = vsyncadd [#allocation5], 4294967168 }
  0x23   :  { %133 = dma.done.wait [#allocation7], 128  }
  0x24   :  { %134 = vsyncadd [#allocation7], 4294967168  ;;  %vm41_vm0 = vcmask 7168   ;;  %s59_s10 = smul.f32 -2.0, %s206_s0  ;;  %v137_v0 = vmov 0.0   ;;  %v43_v3 = vld [vmem:[#allocation4] sm:$0xff] }
  0x25   :  { %42 = vst.msk [vmem:[%s209_s3] sm:$0xff] %vm41_vm0, %v137_v0  ;;  %v44_v4 = vld [vmem:[#allocation6] sm:$0xff]  ;;  %vm48_vm1 = vcmask 261120   ;;  %s64_s16 = smul.f32 2.0, %s206_s0 }
  0x26   :  { %v60_v1 = vstv %s59_s10  ;;  %v45_v5 = vsub.f32 %v43_v3, %v44_v4 }
  0x27   :  { %v61_v2 = vmul.f32 1.442695, %v60_v1  ;;  %s65_s17 = sadd.f32 1.837877, %s64_s16 }
  0x28   :  { %v47_v6 = vmul.f32 %v45_v5, %v45_v5 }
  0x29   :  { %85 = vpow2.f32 %v61_v2  ;;  %s66_s21 = smul.f32 32.0, %s65_s17 }
  0x2a   :  { %v49_v7 = vsel %vm48_vm1, %v47_v6, 0.0 }
  0x2b   :  { %50 = vadd.xlane.f32.xlu0 %v49_v7  ;;  %v70_v14 = vstv %s66_s21 }
  0x2c   :  { %v46_v9 = vld [vmem:[%s209_s3] sm:$0xff] }
  0x33   :  { %v86_v8 = vpop.eup %85 }
  0x34   :  { %80 = vpush %v86_v8 }
  0x65   :  { %s81_s20 = spop %80 }
  0x66   :  { %v68_v12 = vstv %s81_s20 }
  0xb8   :  { %v51_v10 = vpop.xlane.xlu0 %50 }
  0xb9   :  { %v52_v11 = vadd.f32 %v51_v10, %v46_v9 }
  0xbb   :  { %54 = vst.msk [vmem:[%s209_s3] sm:$0xff] %vm41_vm0, %v52_v11 }
  0xc2   :  { %v67_v13 = vld [vmem:[%s209_s3] sm:$0xff] }
  0xc3   :  { %v69_v15 = vmul.f32 %v68_v12, %v67_v13 }
  0xc5   :  { %v71_v16 = vadd.f32 %v70_v14, %v69_v15 }
  0xc7   :  { %v72_v17 = vmul.f32 0.5, %v71_v16 }
  0xc9   :  { %73 = vst.msk [vmem:[%s209_s3] sm:$0xff] %vm41_vm0, %v72_v17 }
  0xca   :  { %78 = vsyncpa [#allocation5], 1 }
  0xcb   :  { %79 = vsyncpa [#allocation7], 1 }

</bundles_post_ra>
